<compile_context>
chip_gen: v7x
topology: tpu7x:2x2x1
jax: 0.10.0
libtpu: 0.0.40
codegen_flags: <defaults>
</compile_context>

<pallas_src>
import functools

import jax
import jax.numpy as jnp
from jax.experimental import pallas as pl
from jax.experimental.pallas import tpu as pltpu


# --------------------------- fused CNN+LSTM kernel ---------------------------
def fused_cnn_lstm_kernel(x_ref, w1_ref, b1_ref, w2_ref, b2_ref,
                          wih_ref, whh_ref, bias_ref, o_ref, *, t_eff, batch):
    # x_ref   : (M, N)      time-major inputs, row t*B + b              (f32)
    # w1_ref  : (N, N*H)    conv1 center-tap as block-diag matmul       (f32)
    # b1_ref  : (1, N*H)    conv1 bias tiled per node                   (f32)
    # w2_ref  : (N*H, N*H)  conv2 center-tap, block-diagonal            (bf16)
    # b2_ref  : (1, N*H)    conv2 bias tiled per node                   (f32)
    # wih_ref : (N*H, 4N)   LSTM input proj, rows n*H+h, cols [i|f|o|g] (bf16)
    # whh_ref : (N, 4N)     LSTM recurrent proj, cols [i|f|o|g]         (f32)
    # bias_ref: (1, 4N)     b_ih + b_hh, cols [i|f|o|g]                 (f32)
    # o_ref   : (M, N)      hidden state h_t for row t*B + b            (f32)
    n = whh_ref.shape[0]

    # --- CNN (exact center-tap form of the (1,3)/pad(0,1) convs on width-1
    # input), batched over all (t, b) rows.  conv1's replicate+scale+bias is
    # folded into one small MXU matmul; conv2 is one block-diagonal matmul.
    y1 = jnp.maximum(
        jnp.dot(x_ref[...], w1_ref[...], preferred_element_type=jnp.float32)
        + b1_ref[...], 0.0)                                          # (M, N*H)
    y2 = jnp.maximum(
        jnp.dot(y1.astype(w2_ref.dtype), w2_ref[...],
                preferred_element_type=jnp.float32) + b2_ref[...], 0.0)

    # --- LSTM input projection hoisted out of the recurrence (all timesteps).
    gx = jnp.dot(y2.astype(wih_ref.dtype), wih_ref[...],
                 preferred_element_type=jnp.float32) + bias_ref[...]  # (M, 4N)

    whh_b = whh_ref[...][None, :, :]           # (1, N, 4N), hoisted out of loop
    h = jnp.zeros((batch, n), jnp.float32)
    c = jnp.zeros((batch, n), jnp.float32)
    hs = []

    # --- short, fully-unrolled serial recurrence (straight-line code).
    for t in range(t_eff):
        # Recurrent term h @ Whh computed as VPU broadcast-multiply + XLU
        # sublane-reduce: keeps the tiny (B,N)@(N,4N) matmul off the per-step
        # MXU weight-load / fill / drain path (the only serial chain here).
        rec = jnp.sum(h[:, :, None] * whh_b, axis=1)                 # (B, 4N)
        gates = gx[t * batch:(t + 1) * batch, :] + rec               # (B, 4N)
        sig = jax.nn.sigmoid(gates[:, :3 * n])                       # i | f | o
        g_g = jnp.tanh(gates[:, 3 * n:])                             # g
        i_g = sig[:, 0:n]
        f_g = sig[:, n:2 * n]
        o_g = sig[:, 2 * n:3 * n]
        c = f_g * c + i_g * g_g
        h = o_g * jnp.tanh(c)
        hs.append(h)

    o_ref[...] = jnp.concatenate(hs, axis=0)   # one store, off the serial path


# ------------------------ one-time weight preparation -------------------------
def prepare_params(params):
    """Pack PyTorch weights into the kernel layout.  Call ONCE at model-load
    time (outside any jitted forward) so the kron/tile/permute plumbing never
    runs on the per-call hot path."""
    f32, bf16 = jnp.float32, jnp.bfloat16
    H = params["conv1_w"].shape[0]
    N = params["w_hh"].shape[1]

    w1c = jnp.asarray(params["conv1_w"], f32)[:, 0, 0, 1]            # (H,) center tap
    b1 = jnp.asarray(params["conv1_b"], f32)                         # (H,)
    w2c = jnp.asarray(params["conv2_w"], f32)[:, :, 0, 1]            # (H_out, H_in)
    b2 = jnp.asarray(params["conv2_b"], f32)                         # (H,)

    # conv1 as a (N, N*H) matmul weight: (x @ w1)[:, n*H+h] == x[:, n] * w1c[h]
    w1 = jnp.kron(jnp.eye(N, dtype=f32), w1c.reshape(1, H))          # (N, N*H)
    b1t = jnp.tile(b1, N).reshape(1, N * H)
    b2t = jnp.tile(b2, N).reshape(1, N * H)
    # conv2 center tap, block-diagonal over nodes (per-node y1 @ w2c.T).
    w2 = jnp.kron(jnp.eye(N, dtype=f32), w2c.T)                      # (N*H, N*H)

    # LSTM weights: PyTorch w_ih columns index feature h*N+n; permute the rows
    # of w_ih.T to the kernel's n*H+h ordering (no in-kernel transpose needed).
    wih_t = jnp.asarray(params["w_ih"], f32).T                       # (H*N, 4N)
    wih = wih_t.reshape(H, N, 4 * N).transpose(1, 0, 2).reshape(N * H, 4 * N)
    whh = jnp.asarray(params["w_hh"], f32).T                         # (N, 4N)
    bias = (jnp.asarray(params["b_ih"], f32)
            + jnp.asarray(params["b_hh"], f32)).reshape(1, 4 * N)

    # Gate-column permutation [i|f|g|o] -> [i|f|o|g]: one sigmoid covers the
    # first 3N gate lanes and one tanh the last N per recurrence step.
    perm = jnp.concatenate([jnp.arange(0, 2 * N), jnp.arange(3 * N, 4 * N),
                            jnp.arange(2 * N, 3 * N)])
    wih = wih[:, perm]
    whh = whh[:, perm]
    bias = bias[:, perm]

    packed = {
        "w1": w1, "b1": b1t, "w2": w2.astype(bf16), "b2": b2t,
        "wih": wih.astype(bf16), "whh": whh, "bias": bias,
    }
    return jax.tree_util.tree_map(jax.block_until_ready, packed)


# --------------------------------- wrapper -----------------------------------
def cnn_lstm_forward(x, packed, horizon):
    """x: (B, T, 1, N, 1) f32, packed = prepare_params(...).
    Returns (B, N, min(T, horizon)) f32, matching the PyTorch forward."""
    f32 = jnp.float32
    B, T, _, N, _ = x.shape
    NH = packed["w2"].shape[0]
    G4 = packed["whh"].shape[1]
    T_eff = min(T, horizon)          # later timesteps never reach the output
    M = T_eff * B

    # Per-call input plumbing only: first T_eff steps, time-major (M, N).
    xt = jnp.transpose(x.reshape(B, T, N)[:, :T_eff].astype(f32),
                       (1, 0, 2)).reshape(M, N)

    kernel = functools.partial(fused_cnn_lstm_kernel, t_eff=T_eff, batch=B)
    vmem = pl.BlockSpec(memory_space=pltpu.MemorySpace.VMEM)

    flops = 2 * M * (N * NH + NH * NH + NH * G4) + T_eff * 2 * B * N * G4
    transcendentals = T_eff * B * 5 * N          # 3N sigmoid + 2N tanh / step
    bytes_accessed = (
        sum(int(a.size) * a.dtype.itemsize
            for a in (xt, packed["w1"], packed["b1"], packed["w2"],
                      packed["b2"], packed["wih"], packed["whh"],
                      packed["bias"]))
        + M * N * 4)

    hs = pl.pallas_call(
        kernel,
        out_shape=jax.ShapeDtypeStruct((M, N), f32),
        in_specs=[vmem] * 8,
        out_specs=vmem,
        cost_estimate=pl.CostEstimate(flops=flops,
                                      transcendentals=transcendentals,
                                      bytes_accessed=bytes_accessed),
    )(xt, packed["w1"], packed["b1"], packed["w2"], packed["b2"],
      packed["wih"], packed["whh"], packed["bias"])

    # glue: (T_eff*B, N) -> (B, N, T_eff)  ==  permute(0, 2, 1)[:, :, :horizon]
    return jnp.transpose(hs.reshape(T_eff, B, N), (1, 2, 0))


# ----------------------------- pure-JAX reference ----------------------------
def ref_forward(x, p, horizon):
    B, T, _, N, _ = x.shape
    xr = x.reshape(B * T, 1, N, 1)
    dn = ("NCHW", "OIHW", "NCHW")
    y = jax.lax.conv_general_dilated(
        xr, p["conv1_w"], (1, 1), ((0, 0), (1, 1)), dimension_numbers=dn
    ) + p["conv1_b"].reshape(1, -1, 1, 1)
    y = jnp.maximum(y, 0.0)
    y = jax.lax.conv_general_dilated(
        y, p["conv2_w"], (1, 1), ((0, 0), (1, 1)), dimension_numbers=dn
    ) + p["conv2_b"].reshape(1, -1, 1, 1)
    y = jnp.maximum(y, 0.0)
    li = y.reshape(B, T, -1)                                     # (B, T, H*N)

    wih, whh = p["w_ih"], p["w_hh"]
    bias = p["b_ih"] + p["b_hh"]

    def step(carry, x_t):
        h, c = carry
        g = x_t @ wih.T + h @ whh.T + bias
        i, f, gg, o = jnp.split(g, 4, axis=-1)
        c = jax.nn.sigmoid(f) * c + jax.nn.sigmoid(i) * jnp.tanh(gg)
        h = jax.nn.sigmoid(o) * jnp.tanh(c)
        return (h, c), h

    h0 = jnp.zeros((B, N), jnp.float32)
    c0 = jnp.zeros((B, N), jnp.float32)
    _, hs = jax.lax.scan(step, (h0, c0), jnp.transpose(li, (1, 0, 2)))
    return jnp.transpose(hs, (1, 2, 0))[:, :, :horizon]


# ------------------------------------ main ------------------------------------
if __name__ == "__main__":
    # Shapes consistent with the module: input_dim=1 (required by its view()),
    # num_nodes=16, seq_len=8, batch=2, hidden_dim=16, horizon=4.
    B, T, N, H, HORIZON = 2, 8, 16, 16, 4

    key = jax.random.PRNGKey(0)
    ks = jax.random.split(key, 9)
    f32 = jnp.float32
    params = {
        "conv1_w": 0.1 * jax.random.normal(ks[0], (H, 1, 1, 3), f32),
        "conv1_b": 0.1 * jax.random.normal(ks[1], (H,), f32),
        "conv2_w": 0.1 * jax.random.normal(ks[2], (H, H, 1, 3), f32),
        "conv2_b": 0.1 * jax.random.normal(ks[3], (H,), f32),
        "w_ih": 0.1 * jax.random.normal(ks[4], (4 * N, H * N), f32),
        "w_hh": 0.1 * jax.random.normal(ks[5], (4 * N, N), f32),
        "b_ih": 0.1 * jax.random.normal(ks[6], (4 * N,), f32),
        "b_hh": 0.1 * jax.random.normal(ks[7], (4 * N,), f32),
        # NOTE: self.fc = Linear(num_nodes, horizon) is never used in forward().
    }
    x = jax.random.normal(ks[8], (B, T, 1, N, 1), f32)

    packed = prepare_params(params)          # one-time, OUTSIDE the jit

    fwd = jax.jit(functools.partial(cnn_lstm_forward, horizon=HORIZON))
    out = jax.block_until_ready(fwd(x, packed))

    ref = jax.block_until_ready(ref_forward(x, params, HORIZON))
    assert out.shape == (B, N, HORIZON), out.shape
    # bf16 MXU operands (f32 accumulation) -> slightly loosened tolerance.
    assert jnp.allclose(out, ref, rtol=5e-2, atol=5e-3), float(
        jnp.max(jnp.abs(out - ref)))

    print("KERNEL_OK")
</pallas_src>

<mosaic_0001>
module attributes {stable_mosaic.version = 11 : i64} {
  func.func @fused_cnn_lstm_kernel(%arg0: memref<8x16xf32, #tpu.memory_space<vmem>>, %arg1: memref<16x256xf32, #tpu.memory_space<vmem>>, %arg2: memref<1x256xf32, #tpu.memory_space<vmem>>, %arg3: memref<256x256xbf16, #tpu.memory_space<vmem>>, %arg4: memref<1x256xf32, #tpu.memory_space<vmem>>, %arg5: memref<256x64xbf16, #tpu.memory_space<vmem>>, %arg6: memref<16x64xf32, #tpu.memory_space<vmem>>, %arg7: memref<1x64xf32, #tpu.memory_space<vmem>>, %arg8: memref<8x16xf32, #tpu.memory_space<vmem>>) attributes {dimension_semantics = [], scalar_prefetch = 0 : i64, scratch_operands = 0 : i64, tpu.core_type = #tpu.core_type<tc>} {
    %c0 = arith.constant 0 : index
    %c0_0 = arith.constant 0 : index
    %0 = vector.load %arg0[%c0, %c0_0] : memref<8x16xf32, #tpu.memory_space<vmem>>, vector<8x16xf32>
    %c0_1 = arith.constant 0 : index
    %c0_2 = arith.constant 0 : index
    %1 = vector.load %arg1[%c0_1, %c0_2] : memref<16x256xf32, #tpu.memory_space<vmem>>, vector<16x256xf32>
    %cst = arith.constant dense<0.000000e+00> : vector<8x256xf32>
    %2 = tpu.matmul %0, %1, %cst {dimension_numbers = #tpu.dot_dimension_numbers<[1], [0], [0], [1], [0, 0, 1, 1], [], []>} : vector<8x16xf32>, vector<16x256xf32>, vector<8x256xf32> -> vector<8x256xf32>
    %c0_3 = arith.constant 0 : index
    %c0_4 = arith.constant 0 : index
    %3 = vector.load %arg2[%c0_3, %c0_4] : memref<1x256xf32, #tpu.memory_space<vmem>>, vector<1x256xf32>
    %4 = vector.broadcast %3 : vector<1x256xf32> to vector<8x256xf32>
    %5 = arith.addf %2, %4 : vector<8x256xf32>
    %cst_5 = arith.constant 0.000000e+00 : f32
    %6 = vector.broadcast %cst_5 : f32 to vector<8x256xf32>
    %7 = arith.maximumf %5, %6 : vector<8x256xf32>
    %8 = arith.truncf %7 : vector<8x256xf32> to vector<8x256xbf16>
    %c0_6 = arith.constant 0 : index
    %c0_7 = arith.constant 0 : index
    %9 = vector.load %arg3[%c0_6, %c0_7] : memref<256x256xbf16, #tpu.memory_space<vmem>>, vector<256x256xbf16>
    %cst_8 = arith.constant dense<0.000000e+00> : vector<8x256xf32>
    %10 = tpu.matmul %8, %9, %cst_8 {dimension_numbers = #tpu.dot_dimension_numbers<[1], [0], [0], [1], [0, 0, 1, 1], [], []>} : vector<8x256xbf16>, vector<256x256xbf16>, vector<8x256xf32> -> vector<8x256xf32>
    %c0_9 = arith.constant 0 : index
    %c0_10 = arith.constant 0 : index
    %11 = vector.load %arg4[%c0_9, %c0_10] : memref<1x256xf32, #tpu.memory_space<vmem>>, vector<1x256xf32>
    %12 = vector.broadcast %11 : vector<1x256xf32> to vector<8x256xf32>
    %13 = arith.addf %10, %12 : vector<8x256xf32>
    %cst_11 = arith.constant 0.000000e+00 : f32
    %14 = vector.broadcast %cst_11 : f32 to vector<8x256xf32>
    %15 = arith.maximumf %13, %14 : vector<8x256xf32>
    %16 = arith.truncf %15 : vector<8x256xf32> to vector<8x256xbf16>
    %c0_12 = arith.constant 0 : index
    %c0_13 = arith.constant 0 : index
    %17 = vector.load %arg5[%c0_12, %c0_13] : memref<256x64xbf16, #tpu.memory_space<vmem>>, vector<256x64xbf16>
    %cst_14 = arith.constant dense<0.000000e+00> : vector<8x64xf32>
    %18 = tpu.matmul %16, %17, %cst_14 {dimension_numbers = #tpu.dot_dimension_numbers<[1], [0], [0], [1], [0, 0, 1, 1], [], []>} : vector<8x256xbf16>, vector<256x64xbf16>, vector<8x64xf32> -> vector<8x64xf32>
    %c0_15 = arith.constant 0 : index
    %c0_16 = arith.constant 0 : index
    %19 = vector.load %arg7[%c0_15, %c0_16] : memref<1x64xf32, #tpu.memory_space<vmem>>, vector<1x64xf32>
    %20 = vector.broadcast %19 : vector<1x64xf32> to vector<8x64xf32>
    %21 = arith.addf %18, %20 : vector<8x64xf32>
    %c0_17 = arith.constant 0 : index
    %c0_18 = arith.constant 0 : index
    %22 = vector.load %arg6[%c0_17, %c0_18] : memref<16x64xf32, #tpu.memory_space<vmem>>, vector<16x64xf32>
    %23 = vector.shape_cast %22 : vector<16x64xf32> to vector<1x16x64xf32>
    %cst_19 = arith.constant 0.000000e+00 : f32
    %24 = vector.broadcast %cst_19 : f32 to vector<2x16xf32>
    %cst_20 = arith.constant 0.000000e+00 : f32
    %25 = vector.broadcast %cst_20 : f32 to vector<2x16xf32>
    %26 = vector.shape_cast %24 : vector<2x16xf32> to vector<2x16x1xf32>
    %27 = vector.broadcast %26 : vector<2x16x1xf32> to vector<2x16x64xf32>
    %28 = vector.broadcast %23 : vector<1x16x64xf32> to vector<2x16x64xf32>
    %29 = arith.mulf %27, %28 : vector<2x16x64xf32>
    %cst_21 = arith.constant dense<0.000000e+00> : vector<2x64xf32>
    %30 = vector.multi_reduction <add>, %29, %cst_21 [1] : vector<2x16x64xf32> to vector<2x64xf32>
    %31 = vector.extract_strided_slice %21 {offsets = [0, 0], sizes = [2, 64], strides = [1, 1]} : vector<8x64xf32> to vector<2x64xf32>
    %32 = arith.addf %31, %30 : vector<2x64xf32>
    %33 = vector.extract_strided_slice %32 {offsets = [0, 0], sizes = [2, 48], strides = [1, 1]} : vector<2x64xf32> to vector<2x48xf32>
    %34 = arith.negf %33 : vector<2x48xf32>
    %35 = math.exp %34 : vector<2x48xf32>
    %cst_22 = arith.constant 1.000000e+00 : f32
    %36 = vector.broadcast %cst_22 : f32 to vector<2x48xf32>
    %37 = arith.addf %36, %35 : vector<2x48xf32>
    %38 = arith.divf %36, %37 : vector<2x48xf32>
    %39 = vector.extract_strided_slice %32 {offsets = [0, 48], sizes = [2, 16], strides = [1, 1]} : vector<2x64xf32> to vector<2x16xf32>
    %40 = math.tanh %39 : vector<2x16xf32>
    %41 = vector.extract_strided_slice %38 {offsets = [0, 0], sizes = [2, 16], strides = [1, 1]} : vector<2x48xf32> to vector<2x16xf32>
    %42 = vector.extract_strided_slice %38 {offsets = [0, 16], sizes = [2, 16], strides = [1, 1]} : vector<2x48xf32> to vector<2x16xf32>
    %43 = vector.extract_strided_slice %38 {offsets = [0, 32], sizes = [2, 16], strides = [1, 1]} : vector<2x48xf32> to vector<2x16xf32>
    %44 = arith.mulf %42, %25 : vector<2x16xf32>
    %45 = arith.mulf %41, %40 : vector<2x16xf32>
    %46 = arith.addf %44, %45 : vector<2x16xf32>
    %47 = math.tanh %46 : vector<2x16xf32>
    %48 = arith.mulf %43, %47 : vector<2x16xf32>
    %49 = vector.shape_cast %48 : vector<2x16xf32> to vector<2x16x1xf32>
    %50 = vector.broadcast %49 : vector<2x16x1xf32> to vector<2x16x64xf32>
    %51 = vector.broadcast %23 : vector<1x16x64xf32> to vector<2x16x64xf32>
    %52 = arith.mulf %50, %51 : vector<2x16x64xf32>
    %cst_23 = arith.constant dense<0.000000e+00> : vector<2x64xf32>
    %53 = vector.multi_reduction <add>, %52, %cst_23 [1] : vector<2x16x64xf32> to vector<2x64xf32>
    %54 = vector.extract_strided_slice %21 {offsets = [2, 0], sizes = [2, 64], strides = [1, 1]} : vector<8x64xf32> to vector<2x64xf32>
    %55 = arith.addf %54, %53 : vector<2x64xf32>
    %56 = vector.extract_strided_slice %55 {offsets = [0, 0], sizes = [2, 48], strides = [1, 1]} : vector<2x64xf32> to vector<2x48xf32>
    %57 = arith.negf %56 : vector<2x48xf32>
    %58 = math.exp %57 : vector<2x48xf32>
    %cst_24 = arith.constant 1.000000e+00 : f32
    %59 = vector.broadcast %cst_24 : f32 to vector<2x48xf32>
    %60 = arith.addf %59, %58 : vector<2x48xf32>
    %61 = arith.divf %59, %60 : vector<2x48xf32>
    %62 = vector.extract_strided_slice %55 {offsets = [0, 48], sizes = [2, 16], strides = [1, 1]} : vector<2x64xf32> to vector<2x16xf32>
    %63 = math.tanh %62 : vector<2x16xf32>
    %64 = vector.extract_strided_slice %61 {offsets = [0, 0], sizes = [2, 16], strides = [1, 1]} : vector<2x48xf32> to vector<2x16xf32>
    %65 = vector.extract_strided_slice %61 {offsets = [0, 16], sizes = [2, 16], strides = [1, 1]} : vector<2x48xf32> to vector<2x16xf32>
    %66 = vector.extract_strided_slice %61 {offsets = [0, 32], sizes = [2, 16], strides = [1, 1]} : vector<2x48xf32> to vector<2x16xf32>
    %67 = arith.mulf %65, %46 : vector<2x16xf32>
    %68 = arith.mulf %64, %63 : vector<2x16xf32>
    %69 = arith.addf %67, %68 : vector<2x16xf32>
    %70 = math.tanh %69 : vector<2x16xf32>
    %71 = arith.mulf %66, %70 : vector<2x16xf32>
    %72 = vector.shape_cast %71 : vector<2x16xf32> to vector<2x16x1xf32>
    %73 = vector.broadcast %72 : vector<2x16x1xf32> to vector<2x16x64xf32>
    %74 = vector.broadcast %23 : vector<1x16x64xf32> to vector<2x16x64xf32>
    %75 = arith.mulf %73, %74 : vector<2x16x64xf32>
    %cst_25 = arith.constant dense<0.000000e+00> : vector<2x64xf32>
    %76 = vector.multi_reduction <add>, %75, %cst_25 [1] : vector<2x16x64xf32> to vector<2x64xf32>
    %77 = vector.extract_strided_slice %21 {offsets = [4, 0], sizes = [2, 64], strides = [1, 1]} : vector<8x64xf32> to vector<2x64xf32>
    %78 = arith.addf %77, %76 : vector<2x64xf32>
    %79 = vector.extract_strided_slice %78 {offsets = [0, 0], sizes = [2, 48], strides = [1, 1]} : vector<2x64xf32> to vector<2x48xf32>
    %80 = arith.negf %79 : vector<2x48xf32>
    %81 = math.exp %80 : vector<2x48xf32>
    %cst_26 = arith.constant 1.000000e+00 : f32
    %82 = vector.broadcast %cst_26 : f32 to vector<2x48xf32>
    %83 = arith.addf %82, %81 : vector<2x48xf32>
    %84 = arith.divf %82, %83 : vector<2x48xf32>
    %85 = vector.extract_strided_slice %78 {offsets = [0, 48], sizes = [2, 16], strides = [1, 1]} : vector<2x64xf32> to vector<2x16xf32>
    %86 = math.tanh %85 : vector<2x16xf32>
    %87 = vector.extract_strided_slice %84 {offsets = [0, 0], sizes = [2, 16], strides = [1, 1]} : vector<2x48xf32> to vector<2x16xf32>
    %88 = vector.extract_strided_slice %84 {offsets = [0, 16], sizes = [2, 16], strides = [1, 1]} : vector<2x48xf32> to vector<2x16xf32>
    %89 = vector.extract_strided_slice %84 {offsets = [0, 32], sizes = [2, 16], strides = [1, 1]} : vector<2x48xf32> to vector<2x16xf32>
    %90 = arith.mulf %88, %69 : vector<2x16xf32>
    %91 = arith.mulf %87, %86 : vector<2x16xf32>
    %92 = arith.addf %90, %91 : vector<2x16xf32>
    %93 = math.tanh %92 : vector<2x16xf32>
    %94 = arith.mulf %89, %93 : vector<2x16xf32>
    %95 = vector.shape_cast %94 : vector<2x16xf32> to vector<2x16x1xf32>
    %96 = vector.broadcast %95 : vector<2x16x1xf32> to vector<2x16x64xf32>
    %97 = vector.broadcast %23 : vector<1x16x64xf32> to vector<2x16x64xf32>
    %98 = arith.mulf %96, %97 : vector<2x16x64xf32>
    %cst_27 = arith.constant dense<0.000000e+00> : vector<2x64xf32>
    %99 = vector.multi_reduction <add>, %98, %cst_27 [1] : vector<2x16x64xf32> to vector<2x64xf32>
    %100 = vector.extract_strided_slice %21 {offsets = [6, 0], sizes = [2, 64], strides = [1, 1]} : vector<8x64xf32> to vector<2x64xf32>
    %101 = arith.addf %100, %99 : vector<2x64xf32>
    %102 = vector.extract_strided_slice %101 {offsets = [0, 0], sizes = [2, 48], strides = [1, 1]} : vector<2x64xf32> to vector<2x48xf32>
    %103 = arith.negf %102 : vector<2x48xf32>
    %104 = math.exp %103 : vector<2x48xf32>
    %cst_28 = arith.constant 1.000000e+00 : f32
    %105 = vector.broadcast %cst_28 : f32 to vector<2x48xf32>
    %106 = arith.addf %105, %104 : vector<2x48xf32>
    %107 = arith.divf %105, %106 : vector<2x48xf32>
    %108 = vector.extract_strided_slice %101 {offsets = [0, 48], sizes = [2, 16], strides = [1, 1]} : vector<2x64xf32> to vector<2x16xf32>
    %109 = math.tanh %108 : vector<2x16xf32>
    %110 = vector.extract_strided_slice %107 {offsets = [0, 0], sizes = [2, 16], strides = [1, 1]} : vector<2x48xf32> to vector<2x16xf32>
    %111 = vector.extract_strided_slice %107 {offsets = [0, 16], sizes = [2, 16], strides = [1, 1]} : vector<2x48xf32> to vector<2x16xf32>
    %112 = vector.extract_strided_slice %107 {offsets = [0, 32], sizes = [2, 16], strides = [1, 1]} : vector<2x48xf32> to vector<2x16xf32>
    %113 = arith.mulf %111, %92 : vector<2x16xf32>
    %114 = arith.mulf %110, %109 : vector<2x16xf32>
    %115 = arith.addf %113, %114 : vector<2x16xf32>
    %116 = math.tanh %115 : vector<2x16xf32>
    %117 = arith.mulf %112, %116 : vector<2x16xf32>
    %118 = tpu.concatenate %48, %71, %94, %117 in 0 : vector<2x16xf32>, vector<2x16xf32>, vector<2x16xf32>, vector<2x16xf32> -> vector<8x16xf32>
    %c0_29 = arith.constant 0 : index
    %c0_30 = arith.constant 0 : index
    %119 = vector.load %arg8[%c0_29, %c0_30] : memref<8x16xf32, #tpu.memory_space<vmem>>, vector<8x16xf32>
    tpu.vector_store %arg8[%c0_29, %c0_30], %118 {strides = array<i32>} : memref<8x16xf32, #tpu.memory_space<vmem>>, vector<8x16xf32>,
    return
  }
}

</mosaic_0001>

<bundles_post_ra>
// kernel: cnn_lstm_forward.1
= control target key start
LH: loop header
LB: loop body
LE: loop exit
PB: predicated region body
PF: predicated region fallthrough
CT: control target
= control target key end

     0   :  { %13 = vsyncpa [#allocation3], 0  ;;  %s1065_s27 = smov [#allocation2]   ;;  %s1285_s0 = inlined_call_operand.vmem [shape: f32[8,16], index: 0, kind: input, shape index: {}]   ;;  %s1286_s1 = inlined_call_operand.vmem [shape: f32[16,256], index: 1, kind: input, shape index: {}]   ;;  %s1287_s2 = inlined_call_operand.vmem [shape: f32[1,256], index: 2, kind: input, shape index: {}]   ;;  %s1288_s3 = inlined_call_operand.hbm [shape: bf16[256,256], index: 3, kind: input, shape index: {}]   ;;  %s1289_s4 = inlined_call_operand.vmem [shape: f32[1,256], index: 4, kind: input, shape index: {}]   ;;  %s1290_s5 = inlined_call_operand.vmem [shape: bf16[256,64], index: 5, kind: input, shape index: {}]   ;;  %s1291_s6 = inlined_call_operand.vmem [shape: f32[16,64], index: 6, kind: input, shape index: {}]   ;;  %s1292_s7 = inlined_call_operand.vmem [shape: f32[1,64], index: 7, kind: input, shape index: {}]   ;;  %s1293_s8 = inlined_call_operand.vmem [shape: f32[8,16], index: 8, kind: output, shape index: {}]  }
   0x1   :  { %s25_s28 = sshll.u32 %s1065_s27, 4  ;;  %s1041_s9 = scalar_lea.hbm %s1288_s3, 4096  ;;  %s26_s28 = int_to_ptr.vmem [resolvable:$true] %s25_s28 }
   0x2   :  { %p1042_p0 = scmp.ne.s32.totalorder %s1288_s3, %s1041_s9  ;;  %p1045_p1 = scmp.lt.u32.totalorder %s1041_s9, %s1288_s3 }
   0x4   :  { %p1047_p2 = pnand %p1045_p1, %p1042_p0 }
   0x6   :  { %1050 = shalt.err (!%p1047_p2)
}
   0x7   :  { %s1051_s14 = scalar_lea.vmem %s26_s28, 4096  ;;  %p1056_p4 = scmp.lt.s32.totalorder %s26_s28, %s26_s28 }
   0x8   :  { %p1052_p3 = scmp.ne.s32.totalorder %s26_s28, %s1051_s14  ;;  %p1057_p5 = scmp.lt.s32.totalorder %s1051_s14, %s1051_s14 }
   0xa   :  { %p1058_p6 = por %p1057_p5, %p1056_p4 }
   0xc   :  { %p1059_p7 = pnand %p1058_p6, %p1052_p3 }
   0xe   :  { %1062 = shalt.err (!%p1059_p7)
}
   0xf   :  { %s1066_s15 = smov 128   ;;  %s1067_s16 = smov 8  }
  0x10   :  { %31 = dma.hbm_to_vmem [thread:$0]  %s1288_s3, 4096, %s26_s28, [#allocation3], %s1066_s15, %s1066_s15, %s1067_s16  }
  0x11   :  { %1063 = dma.done.wait [#allocation3], 4096  }
  0x12   :  { %1064 = vsyncadd [#allocation3], 4294963200  ;;  %v1068_v0 = vmov 0.0   ;;  %v46_v1 = vld [vmem:[%s1286_s1 + $0x8] sm:$0xff]  ;;  %v48_v2 = vld [vmem:[%s1286_s1 + $0x18] sm:$0xff]  ;;  %vm61_vm0 = vcmask 130048   ;;  %v51_v52 = vlaneseq }
  0x13   :  { %129 = vmatprep.mubr.f32.mxu0 %v1068_v0  ;;  %v45_v3 = vld [vmem:[%s1286_s1] sm:$0xff]  ;;  %v934_v4 = vpack.c.bf16 %v48_v2, %v46_v1  ;;  %v47_v5 = vld [vmem:[%s1286_s1 + $0x10] sm:$0xff]  ;;  %v995_v42 = vld [vmem:[%s1290_s5 + $0x48] sm:$0xff]   ;;  %vm568_vm1 = vcmask 523264   ;;  %vm653_vm2 = vcmask 1043459   ;;  %vm732_vm3 = vcmask 1045509  }
  0x14   :  { %v936_v6 = vpack.c.bf16 %v47_v5, %v45_v3  ;;  %v945_v7 = vld [vmem:[#allocation2 + $0x4] ss:$8 sps:$4 sm:$0xff]   ;;  %v947_v8 = vld [vmem:[#allocation2] ss:$8 sps:$4 sm:$0xff]   ;;  %v948_v9 = vld [vmem:[#allocation2 + $0x14] ss:$8 sps:$4 sm:$0xff]  }
  0x15   :  { %935 = vmatprep.subr.bf16.mxu0 %v934_v4  ;;  %v44_v10 = vld [vmem:[%s1285_s0] sm:$0xff]  ;;  %344 = vmatprep.subr.bf16.mxu1 %v945_v7  ;;  %v950_v11 = vld [vmem:[#allocation2 + $0x10] ss:$8 sps:$4 sm:$0xff]   ;;  %v954_v14 = vld [vmem:[#allocation2 + $0x34] ss:$8 sps:$4 sm:$0xff]   ;;  %v1181_v53 = vshrl.u32 %v51_v52, 7 }
  0x16   :  { %937 = vmatpush1.bf16.msra.mxu0 %v936_v6  ;;  %345 = vmatpush1.bf16.msra.mxu1 %v947_v8  ;;  %v951_v12 = vld [vmem:[#allocation2 + $0x24] ss:$8 sps:$4 sm:$0xff]   ;;  %v953_v13 = vld [vmem:[#allocation2 + $0x20] ss:$8 sps:$4 sm:$0xff]   ;;  %v956_v15 = vld [vmem:[#allocation2 + $0x30] ss:$8 sps:$4 sm:$0xff]  }
  0x17   :  { %346 = vmatprep.subr.bf16.mxu1 %v948_v9  ;;  %v957_v16 = vld [vmem:[#allocation2 + $0x44] ss:$8 sps:$4 sm:$0xff]   ;;  %v959_v17 = vld [vmem:[#allocation2 + $0x40] ss:$8 sps:$4 sm:$0xff]   ;;  %v960_v18 = vld [vmem:[#allocation2 + $0x54] ss:$8 sps:$4 sm:$0xff]  }
  0x18   :  { %v962_v19 = vld [vmem:[#allocation2 + $0x50] ss:$8 sps:$4 sm:$0xff]   ;;  %v963_v20 = vld [vmem:[#allocation2 + $0x64] ss:$8 sps:$4 sm:$0xff]   ;;  %v965_v21 = vld [vmem:[#allocation2 + $0x60] ss:$8 sps:$4 sm:$0xff]  }
  0x19   :  { %858 = vmatmul.mubr.msk.f32.vlgmr.msra.gmra.mrb[0].mxu0 %vm61_vm0, %v44_v10  ;;  %v966_v22 = vld [vmem:[#allocation2 + $0x74] ss:$8 sps:$4 sm:$0xff]   ;;  %v968_v23 = vld [vmem:[#allocation2 + $0x70] ss:$8 sps:$4 sm:$0xff]   ;;  %v969_v24 = vld [vmem:[#allocation2 + $0x84] ss:$8 sps:$4 sm:$0xff]  }
  0x1a   :  { %347 = vmatpush1.bf16.msra.mxu1 %v950_v11  ;;  %v971_v25 = vld [vmem:[#allocation2 + $0x80] ss:$8 sps:$4 sm:$0xff]   ;;  %v972_v26 = vld [vmem:[#allocation2 + $0x94] ss:$8 sps:$4 sm:$0xff]   ;;  %v974_v27 = vld [vmem:[#allocation2 + $0x90] ss:$8 sps:$4 sm:$0xff]  }
  0x1b   :  { %348 = vmatprep.subr.bf16.mxu1 %v951_v12  ;;  %v975_v28 = vld [vmem:[#allocation2 + $0xa4] ss:$8 sps:$4 sm:$0xff]   ;;  %v977_v29 = vld [vmem:[#allocation2 + $0xa0] ss:$8 sps:$4 sm:$0xff]   ;;  %v978_v30 = vld [vmem:[#allocation2 + $0xb4] ss:$8 sps:$4 sm:$0xff]  }
  0x1c   :  { %v980_v31 = vld [vmem:[#allocation2 + $0xb0] ss:$8 sps:$4 sm:$0xff]   ;;  %v981_v32 = vld [vmem:[#allocation2 + $0xc4] ss:$8 sps:$4 sm:$0xff]   ;;  %v983_v33 = vld [vmem:[#allocation2 + $0xc0] ss:$8 sps:$4 sm:$0xff]  }
  0x1d   :  { %v984_v34 = vld [vmem:[#allocation2 + $0xd4] ss:$8 sps:$4 sm:$0xff]   ;;  %v986_v35 = vld [vmem:[#allocation2 + $0xd0] ss:$8 sps:$4 sm:$0xff]   ;;  %v987_v36 = vld [vmem:[#allocation2 + $0xe4] ss:$8 sps:$4 sm:$0xff]  }
  0x1e   :  { %349 = vmatpush1.bf16.msra.mxu1 %v953_v13  ;;  %v989_v37 = vld [vmem:[#allocation2 + $0xe0] ss:$8 sps:$4 sm:$0xff]   ;;  %v990_v38 = vld [vmem:[#allocation2 + $0xf4] ss:$8 sps:$4 sm:$0xff]   ;;  %v992_v39 = vld [vmem:[#allocation2 + $0xf0] ss:$8 sps:$4 sm:$0xff]  }
  0x1f   :  { %350 = vmatprep.subr.bf16.mxu1 %v954_v14  ;;  %v993_v40 = vld [vmem:[%s1290_s5 + $0x40] sm:$0xff]   ;;  %v996_v43 = vld [vmem:[%s1290_s5 + $0x8] sm:$0xff]   ;;  %v997_v44 = vld [vmem:[%s1290_s5 + $0x50] sm:$0xff]   ;;  %v1184_v54 = vsub.s32 0, %v1181_v53  ;;  %v1190_v56 = vsub.s32 1, %v1181_v53  ;;  %vm842_vm4 = vcmask 1041408  }
  0x20   :  { %v994_v41 = vld [vmem:[%s1290_s5] sm:$0xff]   ;;  %912 = vmatprep.subr.bf16.mxu0 %v993_v40  ;;  %v998_v45 = vld [vmem:[%s1290_s5 + $0x10] sm:$0xff]   ;;  %v999_v46 = vld [vmem:[%s1290_s5 + $0x58] sm:$0xff]   ;;  %vm844_vm5 = vcmask 1043456   ;;  %vm811_vm6 = vcmask 1047559   ;;  %vm846_vm7 = vcmask 1045504  }
  0x21   :  { %913 = vmatpush3.bf16.msra.mxu0 %v994_v41  ;;  %v1000_v47 = vld [vmem:[%s1290_s5 + $0x18] sm:$0xff]   ;;  %v1001_v48 = vld [vmem:[%s1290_s5 + $0x60] sm:$0xff]   ;;  %v1003_v50 = vld [vmem:[%s1290_s5 + $0x68] sm:$0xff]   ;;  %s1071_s18 = smov 96  }
  0x22   :  { %351 = vmatpush1.bf16.msra.mxu1 %v956_v15  ;;  %914 = vmatprep.subr.bf16.mxu0 %v995_v42  ;;  %v1002_v49 = vld [vmem:[%s1290_s5 + $0x20] sm:$0xff]   ;;  %v1004_v51 = vld [vmem:[%s1290_s5 + $0x28] sm:$0xff]   ;;  %v1005_v3 = vld [vmem:[%s1290_s5 + $0x70] sm:$0xff]  }
  0x23   :  { %352 = vmatprep.subr.bf16.mxu1 %v957_v16  ;;  %v49_v55 = vld [vmem:[%s1287_s2] sm:$0x3]  ;;  %v1006_v4 = vld [vmem:[%s1290_s5 + $0x30] sm:$0xff]   ;;  %v1007_v5 = vld [vmem:[%s1290_s5 + $0x78] sm:$0xff]  }
  0x24   :  { %v54_v57 = vrot.slane %v49_v55, %v1184_v54  ;;  %v58_v58 = vrot.slane %v49_v55, %v1190_v56  ;;  %v1008_v6 = vld [vmem:[%s1290_s5 + $0x38] sm:$0xff]   ;;  %v172_v7 = vld [vmem:[%s1289_s4] sm:$0x3] }
  0x25   :  { %915 = vmatpush3.bf16.msra.mxu0 %v996_v43  ;;  %v177_v8 = vrot.slane %v172_v7, %v1184_v54  ;;  %v181_v9 = vrot.slane %v172_v7, %v1190_v56 }
  0x26   :  { %353 = vmatpush1.bf16.msra.mxu1 %v959_v17  ;;  %916 = vmatprep.subr.bf16.mxu0 %v997_v44 }
  0x27   :  { %354 = vmatprep.subr.bf16.mxu1 %v960_v18 }
  0x29   :  { %917 = vmatpush3.bf16.msra.mxu0 %v998_v45 }
  0x2a   :  { %355 = vmatpush1.bf16.msra.mxu1 %v962_v19  ;;  %918 = vmatprep.subr.bf16.mxu0 %v999_v46 }
  0x2b   :  { %356 = vmatprep.subr.bf16.mxu1 %v963_v20  ;;  %v1214_v20 = vld [vmem:[%s1291_s6] sm:$0xff] }
  0x2d   :  { %919 = vmatpush3.bf16.msra.mxu0 %v1000_v47 }
  0x2e   :  { %357 = vmatpush1.bf16.msra.mxu1 %v965_v21  ;;  %920 = vmatprep.subr.bf16.mxu0 %v1001_v48  ;;  %v1219_v21 = vld [vmem:[%s1291_s6 + $0x8] sm:$0xff]  ;;  %s1069_s6 = smov 80  }
  0x2f   :  { %358 = vmatprep.subr.bf16.mxu1 %v966_v22  ;;  %v566_v22 = vmul.f32 0.0, %v1214_v20 }
  0x31   :  { %921 = vmatpush3.bf16.msra.mxu0 %v1002_v49 }
  0x32   :  { %359 = vmatpush1.bf16.msra.mxu1 %v968_v23  ;;  %922 = vmatprep.subr.bf16.mxu0 %v1003_v50  ;;  %v567_v23 = vmul.f32 0.0, %v1219_v21 }
  0x33   :  { %360 = vmatprep.subr.bf16.mxu1 %v969_v24  ;;  %v569_v24 = vsel %vm568_vm1, %v566_v22, 0.0 }
  0x35   :  { %923 = vmatpush3.bf16.msra.mxu0 %v1004_v51 }
  0x36   :  { %361 = vmatpush1.bf16.msra.mxu1 %v971_v25  ;;  %924 = vmatprep.subr.bf16.mxu0 %v1005_v3  ;;  %v570_v25 = vsel %vm568_vm1, %v567_v23, 0.0 }
  0x37   :  { %362 = vmatprep.subr.bf16.mxu1 %v972_v26  ;;  %v571_v26 = vadd.f32 %v570_v25, %v569_v24 }
  0x39   :  { %925 = vmatpush3.bf16.msra.mxu0 %v1006_v4 }
  0x3a   :  { %363 = vmatpush1.bf16.msra.mxu1 %v974_v27  ;;  %926 = vmatprep.subr.bf16.mxu0 %v1007_v5  ;;  %v572_v27 = vrot.slane %v571_v26, 4 }
  0x3b   :  { %364 = vmatprep.subr.bf16.mxu1 %v975_v28 }
  0x3c   :  { %v573_v28 = vadd.f32 %v572_v27, %v571_v26 }
  0x3d   :  { %927 = vmatpush3.bf16.msra.mxu0 %v1008_v6 }
  0x3e   :  { %365 = vmatpush1.bf16.msra.mxu1 %v977_v29  ;;  %v574_v29 = vrot.slane %v573_v28, 2 }
  0x3f   :  { %366 = vmatprep.subr.bf16.mxu1 %v978_v30 }
  0x40   :  { %v575_v30 = vadd.f32 %v574_v29, %v573_v28 }
  0x42   :  { %367 = vmatpush1.bf16.msra.mxu1 %v980_v31  ;;  %v576_v31 = vrot.slane %v575_v30, 1 }
  0x43   :  { %368 = vmatprep.subr.bf16.mxu1 %v981_v32 }
  0x46   :  { %369 = vmatpush1.bf16.msra.mxu1 %v983_v33  ;;  %v891_v33 = vld [vmem:[%s1292_s7] ss:$0 sm:$0xff]  ;;  %s1070_s7 = smov 16  }
  0x47   :  { %370 = vmatprep.subr.bf16.mxu1 %v984_v34 }
  0x4a   :  { %371 = vmatpush1.bf16.msra.mxu1 %v986_v35 }
  0x4b   :  { %372 = vmatprep.subr.bf16.mxu1 %v987_v36  ;;  %v577_v36 = vadd.f32 %v576_v31, %v575_v30 }
  0x4e   :  { %373 = vmatpush1.bf16.msra.mxu1 %v989_v37 }
  0x4f   :  { %374 = vmatprep.subr.bf16.mxu1 %v990_v38 }
  0x52   :  { %375 = vmatpush1.bf16.msra.mxu1 %v992_v39 }
  0xec   :  { %v131_v59 = vpop.f32.mrb[0].mxu0 }
  0xed   :  { %v132_v60 = vadd.f32 %v131_v59, %v54_v57  ;;  %v133_v61 = vpop.f32.mrb[1].mxu0 }
  0xee   :  { %v134_v62 = vadd.f32 %v133_v61, %v58_v58 }
  0xef   :  { %v136_v63 = vmax.f32 %v132_v60, 0.0 }
  0xf0   :  { %v137_v0 = vmax.f32 %v134_v62, 0.0 }
  0xf1   :  { %v138_v2 = vpack.c.bf16 %v136_v63, %v136_v63 }
  0xf2   :  { %v139_v1 = vpack.c.bf16 %v137_v0, %v137_v0 }
  0xf4   :  { %376 = vmatprep.mubr.bf16.mxu1 %v139_v1 }
  0xf5   :  { %377 = vmatmul.mubr.bf16.vlgmr.msra.gmra.mrb[0].mxu1 %v138_v2 }
 0x1c8   :  { %v378_v10 = vpop.f32.mrb[0].mxu1 }
 0x1c9   :  { %v379_v11 = vadd.f32 %v378_v10, %v177_v8  ;;  %v380_v12 = vpop.f32.mrb[1].mxu1 }
 0x1ca   :  { %v381_v13 = vadd.f32 %v380_v12, %v181_v9  ;;  %v382_v14 = vpop.f32.mrb[2].mxu1 }
 0x1cb   :  { %v385_v15 = vmax.f32 %v379_v11, 0.0  ;;  %v383_v16 = vpop.f32.mrb[3].mxu1 }
 0x1cc   :  { %v386_v17 = vmax.f32 %v381_v13, 0.0 }
 0x1cd   :  { %v387_v19 = vpack.c.bf16 %v385_v15, %v385_v15 }
 0x1ce   :  { %v388_v18 = vpack.c.bf16 %v386_v17, %v386_v17 }
 0x1d0   :  { %556 = vmatprep.mubr.bf16.mxu0 %v388_v18 }
 0x1d1   :  { %557 = vmatmul.mubr.bf16.vlgmr.msra.gmra.mrb[4].mxu0 %v387_v19 }
 0x2a4   :  { %v928_v32 = vpop.f32.mrb[4].mxu0 }
 0x2a5   :  { %v929_v34 = vpop.f32.mrb[5].mxu0 }
 0x2a6   :  { %v930_v35 = vadd.f32 %v929_v34, %v928_v32  ;;  %v931_v37 = vpop.f32.mrb[6].mxu0 }
 0x2a7   :  { %v932_v38 = vpop.f32.mrb[7].mxu0 }
 0x2a8   :  { %v1228_v39 = vadd.f32 %v930_v35, %v891_v33  ;;  %v686_v35 = vsub.s32 2, %v1181_v53 }
 0x2aa   :  { %v580_v40 = vadd.f32 %v577_v36, %v1228_v39 }
 0x2ac   :  { %1009 = vtanh.f32 %v580_v40  ;;  %v908_v42 = vmul.f32 -1.442695, %v580_v40  ;;  %v698_v40 = vsub.s32 3, %v1181_v53 }
 0x2ae   :  { %1011 = vpow2.f32 %v908_v42 }
 0x2b6   :  { %v1010_v41 = vpop.eup %1009 }
 0x2b7   :  { %590 = vrot.lane.b32.xlu0 %v1010_v41, %s1069_s6 }
 0x2b8   :  { %v1012_v43 = vpop.eup %1011 }
 0x2b9   :  { %v584_v44 = vadd.f32 1.0, %v1012_v43 }
 0x2bb   :  { %1013 = vrcp.f32 %v584_v44 }
 0x2c5   :  { %v1014_v45 = vpop.eup %1013 }
 0x2c6   :  { %v588_v48 = vmul.f32 0.0, %v1014_v45 }
 0x329   :  { %v591_v46 = vpop.permute.xlu0 %590 }
 0x32a   :  { %v593_v47 = vmul.f32 %v1014_v45, %v591_v46 }
 0x32c   :  { %595 = vrot.lane.b32.xlu0 %v593_v47, %s1070_s7 }
 0x39e   :  { %v596_v49 = vpop.permute.xlu0 %595 }
 0x39f   :  { %v598_v50 = vadd.f32 %v596_v49, %v588_v48 }
 0x3a1   :  { %1015 = vtanh.f32 %v598_v50  ;;  %v665_v30 = vrot.slane %v598_v50, 6 }
 0x3ab   :  { %v1016_v51 = vpop.eup %1015 }
 0x3ac   :  { %601 = vrot.lane.b32.xlu1 %v1016_v51, %s1070_s7 }
 0x41e   :  { %v602_v52 = vpop.permute.xlu1 %601 }
 0x41f   :  { %v1234_v55 = vmul.f32 %v1014_v45, %v602_v52 }
 0x421   :  { %v608_v57 = vrot.slane %v1234_v55, %v1184_v54  ;;  %v620_v58 = vrot.slane %v1234_v55, %v1190_v56 }
 0x423   :  { %615 = vbcast.lane.b32.xlu0 %v608_v57, 296  ;;  %611 = vbcast.lane.b32.xlu1 %v608_v57, 288 }
 0x427   :  { %627 = vbcast.lane.b32.xlu0 %v620_v58, 296  ;;  %623 = vbcast.lane.b32.xlu1 %v620_v58, 288 }
 0x495   :  { %v616_v59 = vpop.permute.xlu0 %615  ;;  %v612_v60 = vpop.permute.xlu1 %611 }
 0x496   :  { %v630_v61 = vmul.f32 %v616_v59, %v1219_v21  ;;  %v629_v62 = vmul.f32 %v612_v60, %v1214_v20 }
 0x498   :  { %v634_v63 = vsel %vm568_vm1, %v630_v61, 0.0  ;;  %v633_v0 = vsel %vm568_vm1, %v629_v62, 0.0 }
 0x499   :  { %v635_v1 = vadd.f32 %v634_v63, %v633_v0  ;;  %v628_v2 = vpop.permute.xlu0 %627  ;;  %v624_v54 = vpop.permute.xlu1 %623 }
 0x49a   :  { %v632_v3 = vmul.f32 %v628_v2, %v1219_v21  ;;  %v631_v4 = vmul.f32 %v624_v54, %v1214_v20 }
 0x49b   :  { %v636_v56 = vrot.slane %v635_v1, 4 }
 0x49c   :  { %v643_v5 = vsel %vm568_vm1, %v632_v3, 0.0  ;;  %v642_v6 = vsel %vm568_vm1, %v631_v4, 0.0 }
 0x49d   :  { %v637_v7 = vadd.f32 %v636_v56, %v635_v1  ;;  %v644_v8 = vadd.f32 %v643_v5, %v642_v6 }
 0x49f   :  { %v638_v9 = vrot.slane %v637_v7, 2  ;;  %v645_v10 = vrot.slane %v644_v8, 4 }
 0x4a1   :  { %v639_v11 = vadd.f32 %v638_v9, %v637_v7  ;;  %v646_v12 = vadd.f32 %v645_v10, %v644_v8 }
 0x4a3   :  { %v647_v13 = vrot.slane %v646_v12, 2  ;;  %v640_v14 = vrot.slane %v639_v11, 1 }
 0x4a5   :  { %v648_v15 = vadd.f32 %v647_v13, %v646_v12  ;;  %v641_v17 = vadd.f32 %v640_v14, %v639_v11 }
 0x4a7   :  { %v649_v16 = vrot.slane %v648_v15, 1 }
 0x4a9   :  { %v650_v18 = vadd.f32 %v649_v16, %v648_v15 }
 0x4ab   :  { %v654_v19 = vsel %vm653_vm2, %v650_v18, %v641_v17 }
 0x4ac   :  { %v656_v22 = vadd.f32 %v654_v19, %v1228_v39 }
 0x4ae   :  { %1017 = vtanh.f32 %v656_v22  ;;  %v909_v24 = vmul.f32 -1.442695, %v656_v22  ;;  %v765_v22 = vsub.s32 4, %v1181_v53 }
 0x4b0   :  { %1019 = vpow2.f32 %v909_v24 }
 0x4b8   :  { %v1018_v23 = vpop.eup %1017 }
 0x4b9   :  { %669 = vrot.lane.b32.xlu1 %v1018_v23, %s1069_s6 }
 0x4ba   :  { %v1020_v25 = vpop.eup %1019 }
 0x4bb   :  { %v660_v26 = vadd.f32 1.0, %v1020_v25 }
 0x4bd   :  { %1021 = vrcp.f32 %v660_v26 }
 0x4c7   :  { %v1022_v27 = vpop.eup %1021 }
 0x4c8   :  { %v667_v31 = vmul.f32 %v1022_v27, %v665_v30 }
 0x52b   :  { %v670_v28 = vpop.permute.xlu1 %669 }
 0x52c   :  { %v672_v29 = vmul.f32 %v1022_v27, %v670_v28 }
 0x52e   :  { %674 = vrot.lane.b32.xlu0 %v672_v29, %s1070_s7 }
 0x5a0   :  { %v675_v32 = vpop.permute.xlu0 %674 }
 0x5a1   :  { %v677_v33 = vadd.f32 %v675_v32, %v667_v31 }
 0x5a3   :  { %1023 = vtanh.f32 %v677_v33  ;;  %v744_v15 = vrot.slane %v677_v33, 6 }
 0x5ad   :  { %v1024_v34 = vpop.eup %1023 }
 0x5ae   :  { %680 = vrot.lane.b32.xlu1 %v1024_v34, %s1070_s7 }
 0x620   :  { %v681_v36 = vpop.permute.xlu1 %680 }
 0x621   :  { %v683_v37 = vmul.f32 %v1022_v27, %v681_v36  ;;  %v777_v27 = vsub.s32 5, %v1181_v53 }
 0x623   :  { %v687_v38 = vrot.slane %v683_v37, %v686_v35  ;;  %v699_v41 = vrot.slane %v683_v37, %v698_v40  ;;  %v843_v25 = vsel %vm842_vm4, %v1234_v55, %v683_v37 }
 0x625   :  { %694 = vbcast.lane.b32.xlu1 %v687_v38, 296  ;;  %690 = vbcast.lane.b32.xlu0 %v687_v38, 288 }
 0x629   :  { %706 = vbcast.lane.b32.xlu1 %v699_v41, 296  ;;  %702 = vbcast.lane.b32.xlu0 %v699_v41, 288 }
 0x697   :  { %v695_v42 = vpop.permute.xlu1 %694  ;;  %v691_v43 = vpop.permute.xlu0 %690 }
 0x698   :  { %v709_v44 = vmul.f32 %v695_v42, %v1219_v21  ;;  %v708_v45 = vmul.f32 %v691_v43, %v1214_v20 }
 0x69a   :  { %v713_v46 = vsel %vm568_vm1, %v709_v44, 0.0  ;;  %v712_v47 = vsel %vm568_vm1, %v708_v45, 0.0 }
 0x69b   :  { %v714_v48 = vadd.f32 %v713_v46, %v712_v47  ;;  %v707_v49 = vpop.permute.xlu1 %706  ;;  %v703_v50 = vpop.permute.xlu0 %702 }
 0x69c   :  { %v711_v51 = vmul.f32 %v707_v49, %v1219_v21  ;;  %v710_v52 = vmul.f32 %v703_v50, %v1214_v20 }
 0x69d   :  { %v715_v57 = vrot.slane %v714_v48, 4 }
 0x69e   :  { %v722_v58 = vsel %vm568_vm1, %v711_v51, 0.0  ;;  %v721_v59 = vsel %vm568_vm1, %v710_v52, 0.0 }
 0x69f   :  { %v716_v60 = vadd.f32 %v715_v57, %v714_v48  ;;  %v723_v61 = vadd.f32 %v722_v58, %v721_v59 }
 0x6a1   :  { %v717_v62 = vrot.slane %v716_v60, 2  ;;  %v724_v63 = vrot.slane %v723_v61, 4 }
 0x6a3   :  { %v718_v0 = vadd.f32 %v717_v62, %v716_v60  ;;  %v725_v1 = vadd.f32 %v724_v63, %v723_v61 }
 0x6a5   :  { %v726_v2 = vrot.slane %v725_v1, 2  ;;  %v719_v54 = vrot.slane %v718_v0, 1 }
 0x6a7   :  { %v727_v3 = vadd.f32 %v726_v2, %v725_v1  ;;  %v720_v56 = vadd.f32 %v719_v54, %v718_v0 }
 0x6a9   :  { %v728_v4 = vrot.slane %v727_v3, 1 }
 0x6ab   :  { %v729_v5 = vadd.f32 %v728_v4, %v727_v3 }
 0x6ad   :  { %v733_v6 = vsel %vm732_vm3, %v729_v5, %v720_v56 }
 0x6ae   :  { %v735_v7 = vadd.f32 %v733_v6, %v1228_v39 }
 0x6b0   :  { %1025 = vtanh.f32 %v735_v7  ;;  %v910_v9 = vmul.f32 -1.442695, %v735_v7 }
 0x6b2   :  { %1027 = vpow2.f32 %v910_v9 }
 0x6ba   :  { %v1026_v8 = vpop.eup %1025 }
 0x6bb   :  { %748 = vrot.lane.b32.xlu0 %v1026_v8, %s1069_s6 }
 0x6bc   :  { %v1028_v10 = vpop.eup %1027 }
 0x6bd   :  { %v739_v11 = vadd.f32 1.0, %v1028_v10 }
 0x6bf   :  { %1029 = vrcp.f32 %v739_v11 }
 0x6c9   :  { %v1030_v12 = vpop.eup %1029 }
 0x6ca   :  { %v746_v16 = vmul.f32 %v1030_v12, %v744_v15 }
 0x72d   :  { %v749_v13 = vpop.permute.xlu0 %748 }
 0x72e   :  { %v751_v14 = vmul.f32 %v1030_v12, %v749_v13 }
 0x730   :  { %753 = vrot.lane.b32.xlu1 %v751_v14, %s1070_s7 }
 0x7a2   :  { %v754_v17 = vpop.permute.xlu1 %753 }
 0x7a3   :  { %v756_v18 = vadd.f32 %v754_v17, %v746_v16 }
 0x7a5   :  { %1031 = vtanh.f32 %v756_v18  ;;  %v823_v2 = vrot.slane %v756_v18, 6 }
 0x7af   :  { %v1032_v19 = vpop.eup %1031 }
 0x7b0   :  { %759 = vrot.lane.b32.xlu0 %v1032_v19, %s1070_s7 }
 0x822   :  { %v760_v23 = vpop.permute.xlu0 %759 }
 0x823   :  { %v762_v24 = vmul.f32 %v1030_v12, %v760_v23 }
 0x825   :  { %v766_v26 = vrot.slane %v762_v24, %v765_v22  ;;  %v845_v28 = vsel %vm844_vm5, %v843_v25, %v762_v24  ;;  %v778_v29 = vrot.slane %v762_v24, %v777_v27 }
 0x827   :  { %773 = vbcast.lane.b32.xlu0 %v766_v26, 296  ;;  %769 = vbcast.lane.b32.xlu1 %v766_v26, 288 }
 0x82b   :  { %785 = vbcast.lane.b32.xlu0 %v778_v29, 296  ;;  %781 = vbcast.lane.b32.xlu1 %v778_v29, 288 }
 0x899   :  { %v774_v30 = vpop.permute.xlu0 %773  ;;  %v770_v31 = vpop.permute.xlu1 %769 }
 0x89a   :  { %v788_v32 = vmul.f32 %v774_v30, %v1219_v21  ;;  %v787_v33 = vmul.f32 %v770_v31, %v1214_v20 }
 0x89c   :  { %v792_v34 = vsel %vm568_vm1, %v788_v32, 0.0  ;;  %v791_v35 = vsel %vm568_vm1, %v787_v33, 0.0 }
 0x89d   :  { %v793_v55 = vadd.f32 %v792_v34, %v791_v35  ;;  %v786_v36 = vpop.permute.xlu0 %785  ;;  %v782_v37 = vpop.permute.xlu1 %781 }
 0x89e   :  { %v790_v53 = vmul.f32 %v786_v36, %v1219_v21  ;;  %v789_v38 = vmul.f32 %v782_v37, %v1214_v20 }
 0x89f   :  { %v794_v40 = vrot.slane %v793_v55, 4 }
 0x8a0   :  { %v801_v41 = vsel %vm568_vm1, %v790_v53, 0.0  ;;  %v800_v42 = vsel %vm568_vm1, %v789_v38, 0.0 }
 0x8a1   :  { %v795_v43 = vadd.f32 %v794_v40, %v793_v55  ;;  %v802_v44 = vadd.f32 %v801_v41, %v800_v42 }
 0x8a3   :  { %v796_v45 = vrot.slane %v795_v43, 2  ;;  %v803_v46 = vrot.slane %v802_v44, 4 }
 0x8a5   :  { %v797_v47 = vadd.f32 %v796_v45, %v795_v43  ;;  %v804_v48 = vadd.f32 %v803_v46, %v802_v44 }
 0x8a7   :  { %v805_v49 = vrot.slane %v804_v48, 2  ;;  %v798_v50 = vrot.slane %v797_v47, 1 }
 0x8a9   :  { %v806_v51 = vadd.f32 %v805_v49, %v804_v48  ;;  %v799_v57 = vadd.f32 %v798_v50, %v797_v47 }
 0x8ab   :  { %v807_v52 = vrot.slane %v806_v51, 1 }
 0x8ad   :  { %v808_v21 = vadd.f32 %v807_v52, %v806_v51 }
 0x8af   :  { %v812_v58 = vsel %vm811_vm6, %v808_v21, %v799_v57 }
 0x8b0   :  { %v814_v20 = vadd.f32 %v812_v58, %v1228_v39 }
 0x8b2   :  { %1033 = vtanh.f32 %v814_v20  ;;  %v911_v60 = vmul.f32 -1.442695, %v814_v20 }
 0x8b4   :  { %1035 = vpow2.f32 %v911_v60 }
 0x8bc   :  { %v1034_v59 = vpop.eup %1033 }
 0x8bd   :  { %827 = vrot.lane.b32.xlu1 %v1034_v59, %s1069_s6 }
 0x8be   :  { %v1036_v61 = vpop.eup %1035 }
 0x8bf   :  { %v818_v62 = vadd.f32 1.0, %v1036_v61 }
 0x8c1   :  { %1037 = vrcp.f32 %v818_v62 }
 0x8cb   :  { %v1038_v63 = vpop.eup %1037 }
 0x8cc   :  { %v825_v54 = vmul.f32 %v1038_v63, %v823_v2 }
 0x92f   :  { %v828_v0 = vpop.permute.xlu1 %827 }
 0x930   :  { %v830_v1 = vmul.f32 %v1038_v63, %v828_v0 }
 0x932   :  { %832 = vrot.lane.b32.xlu0 %v830_v1, %s1070_s7 }
 0x9a4   :  { %v833_v3 = vpop.permute.xlu0 %832 }
 0x9a5   :  { %v835_v4 = vadd.f32 %v833_v3, %v825_v54 }
 0x9a7   :  { %1039 = vtanh.f32 %v835_v4 }
 0x9b1   :  { %v1040_v39 = vpop.eup %1039 }
 0x9b2   :  { %838 = vrot.lane.b32.xlu1 %v1040_v39, %s1070_s7 }
 0xa24   :  { %v839_v56 = vpop.permute.xlu1 %838 }
 0xa25   :  { %v841_v5 = vmul.f32 %v1038_v63, %v839_v56 }
 0xa27   :  { %v847_v6 = vsel %vm846_vm7, %v845_v28, %v841_v5 }
 0xa28   :  { %849 = vrot.lane.b32.xlu0 %v847_v6, %s1071_s18 }
 0xa9a   :  { %v850_v7 = vpop.permute.xlu0 %849 }
 0xa9b   :  { %852 = vst.msk [vmem:[%s1293_s8] sm:$0xff] %vm61_vm0, %v850_v7 }
 0xa9c   :  { %857 = vsyncpa [#allocation3], 1 }

</bundles_post_ra>
